<compile_context>
chip_gen: v7x
topology: tpu7x:2x2x1
jax: 0.10.0
libtpu: 0.0.40
codegen_flags: <defaults>
</compile_context>

<pallas_src>
import jax
import jax.numpy as jnp
from jax.experimental import pallas as pl
from jax.experimental.pallas import tpu as pltpu


def parser_head_kernel(xT_ref, w1_ref, b1_ref, w2_ref, score_ref):
    # xT_ref:    [D, tile_n] bf16 pooled representations, transposed (this tile)
    # w1_ref:    [D, D]      bf16 first Linear weight, PyTorch-native [out, in] (resident)
    # b1_ref:    [D, 1]      f32  first Linear bias as a column (resident)
    # w2_ref:    [1, D]      bf16 second Linear weight (out=1) row (resident)
    # score_ref: [1, tile_n] f32  raw scores for this tile (lane-dense by construction)

    # ---- Linear(dim, dim) + ReLU: bf16 MXU operands, f32 accumulation ------------
    h = jnp.dot(w1_ref[...], xT_ref[...],
                preferred_element_type=jnp.float32)          # [D, tile_n]
    h = jnp.maximum(h + b1_ref[...], 0.0)

    # ---- Linear(dim, 1) as an M=1 MXU matmul: lands lane-dense in the output -----
    # (b2 dropped: softmax is shift-invariant)
    score_ref[...] = jnp.dot(w2_ref[...], h.astype(jnp.bfloat16),
                             preferred_element_type=jnp.float32)   # [1, tile_n]


def _pick_tile_n(n):
    # Candidate axis is streamed while the weights stay resident.  Larger tiles
    # amortize the ~0.35 us per-grid-step pipeline overhead; a bf16 x^T tile of
    # 768x1024 is 1.5 MiB (x2 buffers) — far under VMEM budgets on v5e/v6e/v7x.
    # Ragged N is padded up to a multiple of the tile by the wrapper.
    for t in (1024, 512, 256, 128):
        if n >= t:
            return t
    return 128


def prepare_params(w1, b1, w2):
    """One-time parameter prep, hoisted out of the per-call path:
    bf16 weight casts + layout (b1 as an f32 [D,1] column, w2 as a bf16 [1,D] row)."""
    w1_bf16 = w1.astype(jnp.bfloat16)                      # [D, D]  PyTorch-native [out, in]
    b1_col = b1.reshape(-1, 1).astype(jnp.float32)         # [D, 1]
    w2_row = w2.reshape(1, -1).astype(jnp.bfloat16)        # [1, D]
    return w1_bf16, b1_col, w2_row


@jax.jit
def parser_model_forward(x, w1_bf16, b1_col, w2_row):
    """x: [N, D] pooled representations (f32); prepared params from prepare_params().
    Returns probs [N] = softmax over the N candidate parses (squeeze() + softmax(dim=0))."""
    N, D = x.shape
    tile_n = _pick_tile_n(N)
    num_tiles = pl.cdiv(N, tile_n)
    n_pad = num_tiles * tile_n

    # Layout plumbing (pad + transpose + bf16 boundary cast), fused by XLA into one
    # pass.  Pad columns produce garbage scores that are sliced off before softmax.
    xT = jnp.pad(x, ((0, n_pad - N), (0, 0))).T.astype(jnp.bfloat16)   # [D, n_pad]

    scores = pl.pallas_call(
        parser_head_kernel,
        out_shape=jax.ShapeDtypeStruct((1, n_pad), jnp.float32),
        grid=(num_tiles,),
        in_specs=[
            pl.BlockSpec((D, tile_n), lambda i: (0, i)),   # x^T: streamed over candidates
            pl.BlockSpec((D, D), lambda i: (0, 0)),        # w1: resident
            pl.BlockSpec((D, 1), lambda i: (0, 0)),        # b1 column: resident
            pl.BlockSpec((1, D), lambda i: (0, 0)),        # w2 row: resident
        ],
        out_specs=pl.BlockSpec((1, tile_n), lambda i: (0, i)),
        # Each tile writes an independent output block -> fully parallel grid
        # (v7x two-TensorCore sharding); the tiny N-scalar softmax runs in XLA.
        compiler_params=pltpu.CompilerParams(
            dimension_semantics=("parallel",)),
    )(xT, w1_bf16, b1_col, w2_row)

    return jax.nn.softmax(scores[0, :N], axis=0)


def init_params(key, dim):
    """PyTorch nn.Linear default init: U(-1/sqrt(in), 1/sqrt(in)); weights [out, in]."""
    k1, k2, k3, k4 = jax.random.split(key, 4)
    bound = 1.0 / jnp.sqrt(dim)
    w1 = jax.random.uniform(k1, (dim, dim), jnp.float32, -bound, bound)  # [out, in]
    b1 = jax.random.uniform(k2, (dim,), jnp.float32, -bound, bound)
    w2 = jax.random.uniform(k3, (1, dim), jnp.float32, -bound, bound)    # [out=1, in]
    b2 = jax.random.uniform(k4, (1,), jnp.float32, -bound, bound)
    return w1, b1, w2, b2


def reference_forward(x, w1, b1, w2, b2):
    # Same precision recipe as the kernel (bf16 MXU operands, f32 accumulation).
    # b2 is kept here (the kernel drops it) to demonstrate the softmax invariance.
    h = jnp.dot(x.astype(jnp.bfloat16), w1.T.astype(jnp.bfloat16),
                preferred_element_type=jnp.float32) + b1               # [N, D]
    h = jnp.maximum(h, 0.0)
    score = jnp.dot(h.astype(jnp.bfloat16), w2.T.astype(jnp.bfloat16),
                    preferred_element_type=jnp.float32).reshape(-1) + b2[0]
    return jax.nn.softmax(score, axis=0)


if __name__ == "__main__":
    # Small shapes: N=8 candidate parses, hidden dim=128 (module default is 768).
    N, DIM = 8, 128
    key = jax.random.PRNGKey(0)
    k_x, k_p = jax.random.split(key)

    # Synthetic pooled representation standing in for self.base(...)[1].
    x = jax.random.normal(k_x, (N, DIM), dtype=jnp.float32)
    w1, b1, w2, b2 = init_params(k_p, DIM)
    w1_bf16, b1_col, w2_row = prepare_params(w1, b1, w2)   # hoisted, one-time

    probs = jax.block_until_ready(parser_model_forward(x, w1_bf16, b1_col, w2_row))
    ref = reference_forward(x, w1, b1, w2, b2)

    assert probs.shape == (N,)
    assert jnp.allclose(jnp.sum(probs), 1.0, atol=1e-5)
    assert jnp.allclose(probs, ref, atol=1e-4, rtol=1e-4)

    print("KERNEL_OK")
</pallas_src>

<mosaic_0001>
module attributes {stable_mosaic.version = 11 : i64} {
  func.func @parser_head_kernel(%arg0: i32, %arg1: memref<128x128xbf16, #tpu.memory_space<vmem>>, %arg2: memref<128x128xbf16, #tpu.memory_space<vmem>>, %arg3: memref<128x1xf32, #tpu.memory_space<vmem>>, %arg4: memref<1x128xbf16, #tpu.memory_space<vmem>>, %arg5: memref<1x128xf32, #tpu.memory_space<vmem>>) attributes {dimension_semantics = [#tpu.dimension_semantics<parallel>], iteration_bounds = array<i64: 1>, scalar_prefetch = 0 : i64, scratch_operands = 0 : i64, tpu.core_type = #tpu.core_type<tc>, window_params = [{transform_indices = @transform_0, window_bounds = array<i64: 128, 128>}, {pipeline_mode = #tpu.pipeline_mode<synchronous>, transform_indices = @transform_1, window_bounds = array<i64: 128, 128>}, {pipeline_mode = #tpu.pipeline_mode<synchronous>, transform_indices = @transform_2, window_bounds = array<i64: 128, 1>}, {pipeline_mode = #tpu.pipeline_mode<synchronous>, transform_indices = @transform_3, window_bounds = array<i64: 1, 128>}, {transform_indices = @transform_4, window_bounds = array<i64: 1, 128>}]} {
    %c0 = arith.constant 0 : index
    %c0_0 = arith.constant 0 : index
    %0 = vector.load %arg2[%c0, %c0_0] : memref<128x128xbf16, #tpu.memory_space<vmem>>, vector<128x128xbf16>
    %c0_1 = arith.constant 0 : index
    %c0_2 = arith.constant 0 : index
    %1 = vector.load %arg1[%c0_1, %c0_2] : memref<128x128xbf16, #tpu.memory_space<vmem>>, vector<128x128xbf16>
    %cst = arith.constant dense<0.000000e+00> : vector<128x128xf32>
    %2 = tpu.matmul %0, %1, %cst {dimension_numbers = #tpu.dot_dimension_numbers<[1], [0], [0], [1], [0, 0, 1, 1], [], []>} : vector<128x128xbf16>, vector<128x128xbf16>, vector<128x128xf32> -> vector<128x128xf32>
    %c0_3 = arith.constant 0 : index
    %c0_4 = arith.constant 0 : index
    %3 = vector.load %arg3[%c0_3, %c0_4] : memref<128x1xf32, #tpu.memory_space<vmem>>, vector<128x1xf32>
    %4 = vector.broadcast %3 : vector<128x1xf32> to vector<128x128xf32>
    %5 = arith.addf %2, %4 : vector<128x128xf32>
    %cst_5 = arith.constant 0.000000e+00 : f32
    %6 = vector.broadcast %cst_5 : f32 to vector<128x128xf32>
    %7 = arith.maximumf %5, %6 : vector<128x128xf32>
    %c0_6 = arith.constant 0 : index
    %c0_7 = arith.constant 0 : index
    %8 = vector.load %arg4[%c0_6, %c0_7] : memref<1x128xbf16, #tpu.memory_space<vmem>>, vector<1x128xbf16>
    %9 = arith.truncf %7 : vector<128x128xf32> to vector<128x128xbf16>
    %cst_8 = arith.constant dense<0.000000e+00> : vector<1x128xf32>
    %10 = tpu.matmul %8, %9, %cst_8 {dimension_numbers = #tpu.dot_dimension_numbers<[1], [0], [0], [1], [0, 0, 1, 1], [], []>} : vector<1x128xbf16>, vector<128x128xbf16>, vector<1x128xf32> -> vector<1x128xf32>
    %c0_9 = arith.constant 0 : index
    %c0_10 = arith.constant 0 : index
    %11 = vector.load %arg5[%c0_9, %c0_10] : memref<1x128xf32, #tpu.memory_space<vmem>>, vector<1x128xf32>
    tpu.vector_store %arg5[%c0_9, %c0_10], %10 {strides = array<i32>} : memref<1x128xf32, #tpu.memory_space<vmem>>, vector<1x128xf32>,
    return
  }
  func.func @transform_0(%arg0: i32) -> (i32, i32) {
    %c0_i32 = arith.constant 0 : i32
    %c0_i32_0 = arith.constant 0 : i32
    return %c0_i32, %arg0 : i32, i32
  }
  func.func @transform_1(%arg0: i32) -> (i32, i32) {
    %c0_i32 = arith.constant 0 : i32
    %c0_i32_0 = arith.constant 0 : i32
    %c0_i32_1 = arith.constant 0 : i32
    return %c0_i32, %c0_i32_0 : i32, i32
  }
  func.func @transform_2(%arg0: i32) -> (i32, i32) {
    %c0_i32 = arith.constant 0 : i32
    %c0_i32_0 = arith.constant 0 : i32
    %c0_i32_1 = arith.constant 0 : i32
    return %c0_i32, %c0_i32_0 : i32, i32
  }
  func.func @transform_3(%arg0: i32) -> (i32, i32) {
    %c0_i32 = arith.constant 0 : i32
    %c0_i32_0 = arith.constant 0 : i32
    %c0_i32_1 = arith.constant 0 : i32
    return %c0_i32, %c0_i32_0 : i32, i32
  }
  func.func @transform_4(%arg0: i32) -> (i32, i32) {
    %c0_i32 = arith.constant 0 : i32
    %c0_i32_0 = arith.constant 0 : i32
    return %c0_i32, %arg0 : i32, i32
  }
}

</mosaic_0001>

<bundles_post_ra>
// kernel: parser_model_forward.1
= control target key start
LH: loop header
LB: loop body
LE: loop exit
PB: predicated region body
PF: predicated region fallthrough
CT: control target
= control target key end

     0   :  { %v523_v1 = vmov 0   ;;  %v524_v33 = vmov 0.0   ;;  %vm525_vm0 = vmmov 0   ;;  %s662_s0 = inlined_call_operand.vmem [shape: bf16[128,128], index: 0, kind: input, shape index: {}]   ;;  %s663_s1 = inlined_call_operand.vmem [shape: bf16[128,128], index: 1, kind: input, shape index: {}]   ;;  %s664_s2 = inlined_call_operand.vmem [shape: f32[128,1], index: 2, kind: input, shape index: {}]   ;;  %s665_s3 = inlined_call_operand.vmem [shape: bf16[1,128], index: 3, kind: input, shape index: {}]   ;;  %s666_s4 = inlined_call_operand.vmem [shape: f32[1,128], index: 4, kind: output, shape index: {}]  }
   0x1   :  { %v507_v0 = vld [vmem:[%s662_s0] sm:$0xff]   ;;  %505 = vset.pattern.permute.xlu0 %v523_v1  ;;  %506 = vset.pattern.permute.xlu1 %v523_v1  ;;  %v508_v2 = vld [vmem:[%s662_s0 + $0x8] sm:$0xff]   ;;  %v509_v3 = vld [vmem:[%s662_s0 + $0x10] sm:$0xff]  }
   0x2   :  { %450 = vmatprep.subr.bf16.mxu0 %v507_v0  ;;  %v510_v4 = vld [vmem:[%s662_s0 + $0x18] sm:$0xff]   ;;  %v515_v5 = vld [vmem:[%s663_s1] sm:$0xff]   ;;  %v512_v7 = vld [vmem:[%s662_s0 + $0x28] sm:$0xff]   ;;  %482 = vmatprep.subr.bf16.mxu1 %v524_v33 }
   0x3   :  { %451 = vmatpush3.bf16.msra.mxu0 %v507_v0  ;;  %466 = vmatprep.mubr.bf16.mxu0 %v515_v5  ;;  %v511_v6 = vld [vmem:[%s662_s0 + $0x20] sm:$0xff]   ;;  %v52_v9 = vld [vmem:[%s664_s2 + $0x10] sm:$0xff]  ;;  %v51_v10 = vld [vmem:[%s664_s2 + $0x8] sm:$0xff] }
   0x4   :  { %452 = vmatprep.subr.bf16.mxu0 %v508_v2  ;;  %v50_v8 = vld [vmem:[%s664_s2] sm:$0xff]  ;;  %78 = vperm.xlu1 %506, %v52_v9   ;;  %v53_v11 = vld [vmem:[%s664_s2 + $0x18] sm:$0xff]  ;;  %v513_v12 = vld [vmem:[%s662_s0 + $0x30] sm:$0xff]  }
   0x5   :  { %68 = vperm.xlu0 %505, %v50_v8   ;;  %v54_v13 = vld [vmem:[%s664_s2 + $0x20] sm:$0xff]  ;;  %v55_v14 = vld [vmem:[%s664_s2 + $0x28] sm:$0xff]  ;;  %v514_v15 = vld [vmem:[%s662_s0 + $0x38] sm:$0xff]   ;;  %498 = vmatprep.mubr.msk.bf16.mxu1 %vm525_vm0, %v524_v33 }
   0x6   :  { %v56_v16 = vld [vmem:[%s664_s2 + $0x30] sm:$0xff]  ;;  %v57_v17 = vld [vmem:[%s664_s2 + $0x38] sm:$0xff]  ;;  %v516_v18 = vld [vmem:[%s663_s1 + $0x8] sm:$0xff]  }
   0x7   :  { %453 = vmatpush3.bf16.msra.mxu0 %v508_v2  ;;  %v58_v19 = vld [vmem:[%s664_s2 + $0x40] sm:$0xff]  ;;  %v59_v20 = vld [vmem:[%s664_s2 + $0x48] sm:$0xff]  ;;  %v517_v21 = vld [vmem:[%s663_s1 + $0x10] sm:$0xff]  }
   0x8   :  { %454 = vmatprep.subr.bf16.mxu0 %v509_v3  ;;  %83 = vperm.xlu1 %506, %v53_v11   ;;  %v60_v22 = vld [vmem:[%s664_s2 + $0x50] sm:$0xff]  ;;  %v61_v23 = vld [vmem:[%s664_s2 + $0x58] sm:$0xff]  ;;  %v62_v25 = vld [vmem:[%s664_s2 + $0x60] sm:$0xff] }
   0x9   :  { %73 = vperm.xlu0 %505, %v51_v10   ;;  %v518_v24 = vld [vmem:[%s663_s1 + $0x18] sm:$0xff]   ;;  %v63_v26 = vld [vmem:[%s664_s2 + $0x68] sm:$0xff]  ;;  %v519_v27 = vld [vmem:[%s663_s1 + $0x20] sm:$0xff]  }
   0xa   :  { %v64_v28 = vld [vmem:[%s664_s2 + $0x70] sm:$0xff]  ;;  %v65_v29 = vld [vmem:[%s664_s2 + $0x78] sm:$0xff]  ;;  %v520_v30 = vld [vmem:[%s663_s1 + $0x28] sm:$0xff]  }
   0xb   :  { %455 = vmatpush3.bf16.msra.mxu0 %v509_v3  ;;  %v521_v31 = vld [vmem:[%s663_s1 + $0x30] sm:$0xff]   ;;  %v522_v32 = vld [vmem:[%s663_s1 + $0x38] sm:$0xff]  }
   0xc   :  { %456 = vmatprep.subr.bf16.mxu0 %v510_v4  ;;  %93 = vperm.xlu1 %506, %v55_v14  }
   0xd   :  { %88 = vperm.xlu0 %505, %v54_v13  }
   0xf   :  { %457 = vmatpush3.bf16.msra.mxu0 %v510_v4 }
  0x10   :  { %458 = vmatprep.subr.bf16.mxu0 %v511_v6  ;;  %103 = vperm.xlu1 %506, %v57_v17  }
  0x11   :  { %98 = vperm.xlu0 %505, %v56_v16  }
  0x13   :  { %459 = vmatpush3.bf16.msra.mxu0 %v511_v6 }
  0x14   :  { %460 = vmatprep.subr.bf16.mxu0 %v512_v7  ;;  %113 = vperm.xlu1 %506, %v59_v20  }
  0x15   :  { %108 = vperm.xlu0 %505, %v58_v19  }
  0x17   :  { %461 = vmatpush3.bf16.msra.mxu0 %v512_v7 }
  0x18   :  { %462 = vmatprep.subr.bf16.mxu0 %v513_v12  ;;  %123 = vperm.xlu1 %506, %v61_v23  }
  0x19   :  { %118 = vperm.xlu0 %505, %v60_v22  }
  0x1b   :  { %463 = vmatpush3.bf16.msra.mxu0 %v513_v12 }
  0x1c   :  { %464 = vmatprep.subr.bf16.mxu0 %v514_v15  ;;  %133 = vperm.xlu1 %506, %v63_v26  }
  0x1d   :  { %128 = vperm.xlu0 %505, %v62_v25  }
  0x1f   :  { %465 = vmatpush3.bf16.msra.mxu0 %v514_v15 }
  0x20   :  { %143 = vperm.xlu1 %506, %v65_v29  }
  0x21   :  { %138 = vperm.xlu0 %505, %v64_v28  }
  0x22   :  { %467 = vmatmul.mubr.bf16.vlgmr.msra.gmra.mrb[0].mxu0 %v516_v18 }
  0x23   :  { %470 = vmatprep.mubr.bf16.mxu0 %v517_v21 }
  0x2a   :  { %471 = vmatmul.mubr.bf16.gmra.mrb[4].mxu0 %v518_v24 }
  0x2b   :  { %474 = vmatprep.mubr.bf16.mxu0 %v519_v27 }
  0x32   :  { %475 = vmatmul.mubr.bf16.gmra.mrb[8].mxu0 %v520_v30 }
  0x33   :  { %478 = vmatprep.mubr.bf16.mxu0 %v521_v31 }
  0x3a   :  { %479 = vmatmul.mubr.bf16.gmra.mrb[12].mxu0 %v522_v32 }
  0x83   :  { %v79_v35 = vpop.permute.xlu1 %78 }
  0x84   :  { %v69_v34 = vpop.permute.xlu0 %68 }
  0x87   :  { %v84_v37 = vpop.permute.xlu1 %83 }
  0x88   :  { %v74_v36 = vpop.permute.xlu0 %73 }
  0x8b   :  { %v94_v39 = vpop.permute.xlu1 %93 }
  0x8c   :  { %v89_v38 = vpop.permute.xlu0 %88 }
  0x8f   :  { %v104_v44 = vpop.permute.xlu1 %103 }
  0x90   :  { %v99_v40 = vpop.permute.xlu0 %98 }
  0x93   :  { %v114_v56 = vpop.permute.xlu1 %113 }
  0x94   :  { %v109_v52 = vpop.permute.xlu0 %108 }
  0x97   :  { %v124_v5 = vpop.permute.xlu1 %123 }
  0x98   :  { %v119_v1 = vpop.permute.xlu0 %118 }
  0x9b   :  { %v134_v18 = vpop.permute.xlu1 %133 }
  0x9c   :  { %v129_v13 = vpop.permute.xlu0 %128 }
  0x9f   :  { %v144_v30 = vpop.permute.xlu1 %143 }
  0xa0   :  { %v139_v25 = vpop.permute.xlu0 %138 }
  0xf5   :  { %v468_v41 = vpop.f32.mrb[0].mxu0 }
  0xf6   :  { %v285_v42 = vadd.f32 %v468_v41, %v79_v35  ;;  %v276_v43 = vpop.f32.mrb[1].mxu0 }
  0xf7   :  { %v277_v45 = vadd.f32 %v276_v43, %v69_v34  ;;  %v469_v46 = vpop.f32.mrb[2].mxu0  ;;  %v355_v43 = vld [vmem:[%s665_s3] sm:$0x1] }
  0xf8   :  { %v288_v47 = vadd.f32 %v469_v46, %v84_v37  ;;  %v279_v48 = vpop.f32.mrb[3].mxu0  ;;  %v341_v50 = vmax.f32 %v285_v42, 0.0 }
  0xf9   :  { %v280_v49 = vadd.f32 %v279_v48, %v74_v36  ;;  %v339_v53 = vmax.f32 %v277_v45, 0.0 }
  0xfa   :  { %v342_v51 = vmax.f32 %v288_v47, 0.0 }
  0xfb   :  { %v340_v54 = vmax.f32 %v280_v49, 0.0 }
  0xfc   :  { %v357_v55 = vpack.c.bf16 %v342_v51, %v341_v50 }
  0xfd   :  { %v472_v57 = vpop.f32.mrb[4].mxu0  ;;  %v356_v58 = vpack.c.bf16 %v340_v54, %v339_v53 }
  0xfe   :  { %v301_v59 = vadd.f32 %v472_v57, %v99_v40  ;;  %v292_v60 = vpop.f32.mrb[5].mxu0 }
  0xff   :  { %v293_v61 = vadd.f32 %v292_v60, %v89_v38  ;;  %v473_v62 = vpop.f32.mrb[6].mxu0  ;;  %483 = vmatpush3.bf16.msra.mxu1 %v356_v58 }
 0x100   :  { %v304_v63 = vadd.f32 %v473_v62, %v104_v44  ;;  %v295_v0 = vpop.f32.mrb[7].mxu0  ;;  %484 = vmatprep.subr.bf16.mxu1 %v524_v33  ;;  %v345_v3 = vmax.f32 %v301_v59, 0.0 }
 0x101   :  { %v296_v2 = vadd.f32 %v295_v0, %v94_v39  ;;  %v343_v6 = vmax.f32 %v293_v61, 0.0 }
 0x102   :  { %v346_v4 = vmax.f32 %v304_v63, 0.0 }
 0x103   :  { %v344_v7 = vmax.f32 %v296_v2, 0.0  ;;  %485 = vmatpush3.bf16.msra.mxu1 %v357_v55 }
 0x104   :  { %v359_v8 = vpack.c.bf16 %v346_v4, %v345_v3  ;;  %486 = vmatprep.subr.bf16.mxu1 %v524_v33 }
 0x105   :  { %v358_v9 = vpack.c.bf16 %v344_v7, %v343_v6  ;;  %v476_v10 = vpop.f32.mrb[8].mxu0 }
 0x106   :  { %v317_v11 = vadd.f32 %v476_v10, %v119_v1  ;;  %v308_v12 = vpop.f32.mrb[9].mxu0 }
 0x107   :  { %v309_v14 = vadd.f32 %v308_v12, %v109_v52  ;;  %v477_v15 = vpop.f32.mrb[10].mxu0  ;;  %487 = vmatpush3.bf16.msra.mxu1 %v358_v9 }
 0x108   :  { %v320_v16 = vadd.f32 %v477_v15, %v124_v5  ;;  %v311_v17 = vpop.f32.mrb[11].mxu0  ;;  %488 = vmatprep.subr.bf16.mxu1 %v524_v33  ;;  %v349_v20 = vmax.f32 %v317_v11, 0.0 }
 0x109   :  { %v312_v19 = vadd.f32 %v311_v17, %v114_v56  ;;  %v347_v22 = vmax.f32 %v309_v14, 0.0 }
 0x10a   :  { %v350_v21 = vmax.f32 %v320_v16, 0.0 }
 0x10b   :  { %v348_v23 = vmax.f32 %v312_v19, 0.0  ;;  %489 = vmatpush3.bf16.msra.mxu1 %v359_v8 }
 0x10c   :  { %v361_v24 = vpack.c.bf16 %v350_v21, %v349_v20  ;;  %490 = vmatprep.subr.bf16.mxu1 %v524_v33 }
 0x10d   :  { %v360_v26 = vpack.c.bf16 %v348_v23, %v347_v22  ;;  %v480_v27 = vpop.f32.mrb[12].mxu0 }
 0x10e   :  { %v333_v28 = vadd.f32 %v480_v27, %v139_v25  ;;  %v324_v29 = vpop.f32.mrb[13].mxu0 }
 0x10f   :  { %v325_v31 = vadd.f32 %v324_v29, %v129_v13  ;;  %v481_v32 = vpop.f32.mrb[14].mxu0  ;;  %491 = vmatpush3.bf16.msra.mxu1 %v360_v26 }
 0x110   :  { %v336_v34 = vadd.f32 %v481_v32, %v144_v30  ;;  %v327_v35 = vpop.f32.mrb[15].mxu0  ;;  %492 = vmatprep.subr.bf16.mxu1 %v524_v33  ;;  %v353_v37 = vmax.f32 %v333_v28, 0.0 }
 0x111   :  { %v328_v36 = vadd.f32 %v327_v35, %v134_v18  ;;  %v351_v39 = vmax.f32 %v325_v31, 0.0 }
 0x112   :  { %v354_v38 = vmax.f32 %v336_v34, 0.0 }
 0x113   :  { %v352_v40 = vmax.f32 %v328_v36, 0.0  ;;  %493 = vmatpush3.bf16.msra.mxu1 %v361_v24 }
 0x114   :  { %v363_v41 = vpack.c.bf16 %v354_v38, %v353_v37  ;;  %494 = vmatprep.subr.bf16.mxu1 %v524_v33 }
 0x115   :  { %v362_v42 = vpack.c.bf16 %v352_v40, %v351_v39 }
 0x117   :  { %495 = vmatpush3.bf16.msra.mxu1 %v362_v42 }
 0x118   :  { %496 = vmatprep.subr.bf16.mxu1 %v524_v33 }
 0x11b   :  { %497 = vmatpush3.bf16.msra.mxu1 %v363_v41 }
 0x11e   :  { %499 = vmatmul.mubr.bf16.vlgmr.msra.gmra.mrb[0].mxu1 %v355_v43 }
 0x1f1   :  { %v398_v44 = vpop.f32.mrb[0].mxu1 }
 0x1f2   :  { %404 = vst [vmem:[%s666_s4] sm:$0x1] %v398_v44  ;;  %v500_v45 = vpop.f32.mrb[1].mxu1 }
 0x1f3   :  { %v401_v46 = vpop.f32.mrb[2].mxu1 }
 0x1f4   :  { %v501_v47 = vpop.f32.mrb[3].mxu1 }

</bundles_post_ra>
